<compile_context>
chip_gen: v5e
topology: v5e:2x2
jax: 0.10.0
libtpu: 0.0.40
codegen_flags: <defaults>
</compile_context>

<pallas_src>
import math
from functools import partial

import jax
import jax.numpy as jnp
from jax.experimental import pallas as pl
from jax.experimental.pallas import tpu as pltpu

_VMEM_LIMIT = 32 * 1024 * 1024   # >= v5e default (16MB), <= v7x physical (64MB)
_FAST_CONV = [True]              # flips to False if the optimized lowering is rejected
_GMAT_CACHE = {}                 # (C, groups) -> one-hot channel->group matrix


def _group_onehot(C, groups):
    key = (C, groups)
    if key not in _GMAT_CACHE:
        _GMAT_CACHE[key] = (jnp.arange(C)[:, None] // (C // groups)
                            == jnp.arange(groups)[None, :]).astype(jnp.float32)
    return _GMAT_CACHE[key]


# ----------------------------------------------------------------------------
# in-kernel helpers
# ----------------------------------------------------------------------------

def _gn_transform(xf, gm, gamma, beta, cnt, eps):
    """Two-pass GroupNorm on a (rows, C) f32 tile (no E[x^2]-E[x]^2 cancellation).
    gm is a (C, G) one-hot channel->group map (group reduce via MXU)."""
    mean_c = jnp.dot(jnp.dot(jnp.sum(xf, axis=0, keepdims=True), gm,
                             preferred_element_type=jnp.float32) / cnt,
                     gm.T, preferred_element_type=jnp.float32)
    d = xf - mean_c
    var_g = jnp.dot(jnp.sum(d * d, axis=0, keepdims=True), gm,
                    preferred_element_type=jnp.float32) / cnt
    rstd_c = jnp.dot(jax.lax.rsqrt(var_g + eps), gm.T,
                     preferred_element_type=jnp.float32)
    return d * rstd_c * gamma + beta


# ----------------------------------------------------------------------------
# fused GroupNorm(+scale/shift)+SiLU -> 3x3 conv (+residual / 1x1 skip) kernel
# ----------------------------------------------------------------------------

def _fused_conv_kernel(*refs, H, W, Cin, Cout, cr, groups, eps,
                       use_gn, use_ss, act_silu, stride, res_mode, fast):
    o_ref, pad_ref = refs[-2], refs[-1]
    it = iter(refs[:-2])
    x_ref = next(it)
    w_ref = next(it)                      # (3, 3*Cin, Cout) bf16, kx-major packing
    b_ref = next(it)                      # (1, Cout) f32
    if use_gn:
        gmat_ref = next(it)               # (Cin, G) f32 one-hot
        gamma_ref = next(it)              # (1, Cin) f32
        beta_ref = next(it)
    if use_ss:
        scale_ref = next(it)              # (1, Cin) f32, per-sample FiLM
        shift_ref = next(it)
    if res_mode is not None:
        res_ref = next(it)                # (1, Ho, Wo, cr) bf16
        if res_mode == "proj":
            skw_ref = next(it)            # (cr, Cout) bf16
            skb_ref = next(it)            # (1, Cout) f32

    Ho, Wo = H // stride, W // stride

    # ---- pre-conv pointwise transform (GroupNorm + FiLM + SiLU), fused --------
    if use_gn:
        xf = x_ref[...][0].astype(jnp.float32).reshape(H * W, Cin)
        cnt = float(H * W * (Cin // groups))
        h = _gn_transform(xf, gmat_ref[...], gamma_ref[...], beta_ref[...], cnt, eps)
        if use_ss:
            h = h * (1.0 + scale_ref[...]) + shift_ref[...]
        if act_silu:
            h = h * jax.nn.sigmoid(h)
        h = h.reshape(H, W, Cin).astype(jnp.bfloat16)
    else:
        h = x_ref[...][0]
        if act_silu:
            hf = h.astype(jnp.float32)
            h = (hf * jax.nn.sigmoid(hf)).astype(jnp.bfloat16)

    # ---- 1-pixel zero halo in VMEM (no HBM pad) --------------------------------
    pad_ref[...] = jnp.zeros((H + 2, W + 2, Cin), jnp.bfloat16)
    pad_ref[1:H + 1, 1:W + 1, :] = h

    # ---- 3x3 conv --------------------------------------------------------------
    if fast and stride == 1 and Cin >= 32:
        # pack the 3 ky taps into one contraction: K = 3*Cin per matmul
        slab = jnp.concatenate([pad_ref[ky:ky + H, :, :] for ky in range(3)],
                               axis=-1)                        # (H, W+2, 3*Cin)
        acc = jnp.zeros((H * W, Cout), jnp.float32)
        for kx in range(3):
            acc = acc + jnp.dot(slab[:, kx:kx + W, :].reshape(H * W, 3 * Cin),
                                w_ref[kx], preferred_element_type=jnp.float32)
    else:
        acc = jnp.zeros((Ho * Wo, Cout), jnp.float32)
        for ky in range(3):
            for kx in range(3):
                if stride == 1:
                    patch = pad_ref[ky:ky + Ho, kx:kx + Wo, :]
                else:
                    # in-kernel stride-2: strided window reads (no 4x FLOPs,
                    # no full-res HBM writeback)
                    patch = pad_ref[pl.ds(ky, Ho, stride=stride),
                                    pl.ds(kx, Wo, stride=stride), :]
                acc = acc + jnp.dot(patch.reshape(Ho * Wo, Cin),
                                    w_ref[kx, ky * Cin:(ky + 1) * Cin, :],
                                    preferred_element_type=jnp.float32)

    y = acc + b_ref[...]

    # ---- fused residual / 1x1 skip-projection epilogue -------------------------
    if res_mode == "add":
        y = y + res_ref[...][0].reshape(Ho * Wo, Cout).astype(jnp.float32)
    elif res_mode == "proj":
        r = res_ref[...][0].reshape(Ho * Wo, cr)
        y = y + jnp.dot(r, skw_ref[...], preferred_element_type=jnp.float32) \
              + skb_ref[...]

    o_ref[...] = y.reshape(1, Ho, Wo, Cout).astype(o_ref.dtype)


def _conv_pallas(x, w, b, gn, scale, shift, silu, stride, residual, skip_w,
                 skip_b, groups, eps, fast):
    N, H, W, Cin = x.shape
    Cout = w.shape[-1]
    Ho, Wo = H // stride, W // stride
    use_gn = gn is not None
    use_ss = scale is not None
    res_mode = None
    cr = 0
    if residual is not None:
        res_mode = "proj" if skip_w is not None else "add"
        cr = residual.shape[-1]

    # weights repacked kx-major: wk[kx, ky*Cin + c, o] = w[ky, kx, c, o]
    wk = jnp.transpose(w.astype(jnp.bfloat16), (1, 0, 2, 3)).reshape(3, 3 * Cin, Cout)

    inputs = [x.astype(jnp.bfloat16), wk, b.reshape(1, Cout).astype(jnp.float32)]
    in_specs = [pl.BlockSpec((1, H, W, Cin), lambda n: (n, 0, 0, 0)),
                pl.BlockSpec((3, 3 * Cin, Cout), lambda n: (0, 0, 0)),
                pl.BlockSpec((1, Cout), lambda n: (0, 0))]
    if use_gn:
        gamma, beta = gn
        gmat = _group_onehot(Cin, groups)
        inputs += [gmat, gamma.reshape(1, Cin).astype(jnp.float32),
                   beta.reshape(1, Cin).astype(jnp.float32)]
        in_specs += [pl.BlockSpec((Cin, groups), lambda n: (0, 0)),
                     pl.BlockSpec((1, Cin), lambda n: (0, 0)),
                     pl.BlockSpec((1, Cin), lambda n: (0, 0))]
    if use_ss:
        inputs += [scale.astype(jnp.float32), shift.astype(jnp.float32)]
        in_specs += [pl.BlockSpec((1, Cin), lambda n: (n, 0)),
                     pl.BlockSpec((1, Cin), lambda n: (n, 0))]
    if res_mode is not None:
        inputs += [residual.astype(jnp.bfloat16)]
        in_specs += [pl.BlockSpec((1, Ho, Wo, cr), lambda n: (n, 0, 0, 0))]
        if res_mode == "proj":
            inputs += [skip_w.astype(jnp.bfloat16),
                       skip_b.reshape(1, Cout).astype(jnp.float32)]
            in_specs += [pl.BlockSpec((cr, Cout), lambda n: (0, 0)),
                         pl.BlockSpec((1, Cout), lambda n: (0, 0))]

    kernel = partial(_fused_conv_kernel, H=H, W=W, Cin=Cin, Cout=Cout, cr=cr,
                     groups=groups, eps=eps, use_gn=use_gn, use_ss=use_ss,
                     act_silu=silu, stride=stride, res_mode=res_mode, fast=fast)
    # TODO(synk): for very large feature maps add a Cout / H-row grid axis so
    # each block set stays within v7x's 64 MiB VMEM.
    return pl.pallas_call(
        kernel,
        grid=(N,),
        in_specs=in_specs,
        out_specs=pl.BlockSpec((1, Ho, Wo, Cout), lambda n: (n, 0, 0, 0)),
        out_shape=jax.ShapeDtypeStruct((N, Ho, Wo, Cout), jnp.bfloat16),
        scratch_shapes=[pltpu.VMEM((H + 2, W + 2, Cin), jnp.bfloat16)],
        compiler_params=pltpu.CompilerParams(
            dimension_semantics=("parallel",),
            vmem_limit_bytes=_VMEM_LIMIT),
    )(*inputs)


def fused_conv3x3(x, w, b, *, gn=None, scale=None, shift=None, silu=False,
                  stride=1, residual=None, skip_w=None, skip_b=None,
                  groups=32, eps=1e-5):
    """GroupNorm(+FiLM)+SiLU -> 3x3 conv (pad=1, stride 1|2) -> +residual/1x1 skip."""
    if stride == 2:
        assert residual is None
    if _FAST_CONV[0]:
        try:
            return _conv_pallas(x, w, b, gn, scale, shift, silu, stride,
                                residual, skip_w, skip_b, groups, eps, fast=True)
        except Exception:
            # Mosaic rejected an optimized construct (strided ref read / lane
            # concat) on this backend -> fall back to the portable path.
            _FAST_CONV[0] = False
    if stride == 2:
        out = _conv_pallas(x, w, b, gn, scale, shift, silu, 1, None, None, None,
                           groups, eps, fast=False)
        return out[:, ::2, ::2, :]
    return _conv_pallas(x, w, b, gn, scale, shift, silu, 1, residual,
                        skip_w, skip_b, groups, eps, fast=False)


# ----------------------------------------------------------------------------
# small fused matmul kernel (emb MLPs, batched FiLM projection, attn out-proj)
# ----------------------------------------------------------------------------

def _linear_kernel(*refs, act, pre_silu, has_res):
    if has_res:
        x_ref, w_ref, b_ref, r_ref, o_ref = refs
    else:
        x_ref, w_ref, b_ref, o_ref = refs
    x = x_ref[...]
    if pre_silu:
        xf = x.astype(jnp.float32)
        x = (xf * jax.nn.sigmoid(xf)).astype(x.dtype)
    y = jnp.dot(x, w_ref[...], preferred_element_type=jnp.float32) + b_ref[...]
    if has_res:
        y = y + r_ref[...].astype(jnp.float32)
    if act == "silu":
        y = y * jax.nn.sigmoid(y)
    o_ref[...] = y.astype(o_ref.dtype)


def linear(x, w, b, *, act=None, pre_silu=False, residual=None,
           out_dtype=jnp.float32):
    M = x.shape[0]
    Nc = w.shape[-1]
    args = [x, w, b.reshape(1, Nc).astype(jnp.float32)]
    if residual is not None:
        args.append(residual)
    return pl.pallas_call(
        partial(_linear_kernel, act=act, pre_silu=pre_silu,
                has_res=residual is not None),
        out_shape=jax.ShapeDtypeStruct((M, Nc), out_dtype),
    )(*args)


# ----------------------------------------------------------------------------
# fused GroupNorm -> qkv projection kernel (attention front-end)
# ----------------------------------------------------------------------------

def _gn_linear_kernel(x_ref, gmat_ref, gamma_ref, beta_ref, w_ref, b_ref, o_ref,
                      *, T, C, groups, eps):
    xf = x_ref[...][0].astype(jnp.float32)          # (T, C)
    cnt = float(T * (C // groups))
    h = _gn_transform(xf, gmat_ref[...], gamma_ref[...], beta_ref[...], cnt, eps)
    y = jnp.dot(h.astype(jnp.bfloat16), w_ref[...],
                preferred_element_type=jnp.float32) + b_ref[...]
    o_ref[...] = y.reshape(1, T, y.shape[1]).astype(o_ref.dtype)


def gn_linear(x, gamma, beta, w, b, *, groups=32, eps=1e-5):
    N, T, C = x.shape
    Nout = w.shape[-1]
    gmat = _group_onehot(C, groups)
    return pl.pallas_call(
        partial(_gn_linear_kernel, T=T, C=C, groups=groups, eps=eps),
        grid=(N,),
        in_specs=[pl.BlockSpec((1, T, C), lambda n: (n, 0, 0)),
                  pl.BlockSpec((C, groups), lambda n: (0, 0)),
                  pl.BlockSpec((1, C), lambda n: (0, 0)),
                  pl.BlockSpec((1, C), lambda n: (0, 0)),
                  pl.BlockSpec((C, Nout), lambda n: (0, 0)),
                  pl.BlockSpec((1, Nout), lambda n: (0, 0))],
        out_specs=pl.BlockSpec((1, T, Nout), lambda n: (n, 0, 0)),
        out_shape=jax.ShapeDtypeStruct((N, T, Nout), jnp.bfloat16),
        compiler_params=pltpu.CompilerParams(
            dimension_semantics=("parallel",),
            vmem_limit_bytes=_VMEM_LIMIT),
    )(x.astype(jnp.bfloat16), gmat,
      gamma.reshape(1, C).astype(jnp.float32),
      beta.reshape(1, C).astype(jnp.float32),
      w.astype(jnp.bfloat16), b.reshape(1, Nout).astype(jnp.float32))


# ----------------------------------------------------------------------------
# multi-head self-attention kernel (reads packed qkv directly, no transposes)
# ----------------------------------------------------------------------------

def _attn_kernel(qkv_ref, o_ref, *, T, heads, dh):
    # TODO(synk): for large T (>~1k) switch to flash-style KV tiling; at UNet
    # attention resolutions in this config T <= 256, so full (T,T) fits easily.
    qkv = qkv_ref[...][0]                           # (T, 3*heads*dh) bf16
    for h in range(heads):
        base = h * 3 * dh
        q = qkv[:, base:base + dh]                  # q already scaled by 1/sqrt(dh)
        k = qkv[:, base + dh:base + 2 * dh]
        v = qkv[:, base + 2 * dh:base + 3 * dh]
        s = jax.lax.dot_general(q, k, (((1,), (1,)), ((), ())),
                                preferred_element_type=jnp.float32)
        s = s - jnp.max(s, axis=-1, keepdims=True)
        p = jnp.exp(s)
        l = jnp.sum(p, axis=-1, keepdims=True)
        o = jnp.dot(p.astype(jnp.bfloat16), v, preferred_element_type=jnp.float32)
        o = o * pl.reciprocal(l, approx=True)
        o_ref[0, :, h * dh:(h + 1) * dh] = o.astype(o_ref.dtype)


def attention(qkv, heads):
    N, T, C3 = qkv.shape
    C = C3 // 3
    dh = C // heads
    return pl.pallas_call(
        partial(_attn_kernel, T=T, heads=heads, dh=dh),
        grid=(N,),
        in_specs=[pl.BlockSpec((1, T, C3), lambda n: (n, 0, 0))],
        out_specs=pl.BlockSpec((1, T, C), lambda n: (n, 0, 0)),
        out_shape=jax.ShapeDtypeStruct((N, T, C), jnp.bfloat16),
        compiler_params=pltpu.CompilerParams(
            dimension_semantics=("parallel",),
            vmem_limit_bytes=_VMEM_LIMIT),
    )(qkv)


# ----------------------------------------------------------------------------
# Parameter construction (deterministic, mirrors UNet.__init__ structure)
# ----------------------------------------------------------------------------

def build_unet(key, *, base_channels, mults, res_blocks, att_factors, heads,
               i_emb_size, t_emb_size, mid_emb, in_channels, out_channels):
    cnt = [0]
    all_res = []

    def nk():
        cnt[0] += 1
        return jax.random.fold_in(key, cnt[0])

    def lin_init(k, fi, fo, dtype=jnp.float32):
        w = (jax.random.normal(k, (fi, fo), jnp.float32)
             / jnp.sqrt(float(fi))).astype(dtype)
        return w, jnp.zeros((fo,), jnp.float32)

    def conv_init(k, cin, cout):
        w = (jax.random.normal(k, (3, 3, cin, cout), jnp.float32)
             / jnp.sqrt(9.0 * cin)).astype(jnp.bfloat16)
        return w, jnp.zeros((cout,), jnp.float32)

    def make_res(cin, cout, sample=None):
        p = {"cin": cin, "cout": cout, "sample": sample, "bid": len(all_res),
             "gn1_g": jnp.ones((cin,), jnp.float32),
             "gn1_b": jnp.zeros((cin,), jnp.float32),
             "gn2_g": jnp.ones((cout,), jnp.float32),
             "gn2_b": jnp.zeros((cout,), jnp.float32)}
        p["ci_w"], p["ci_b"] = conv_init(nk(), cin, cout)
        p["emb_w"], p["emb_b"] = lin_init(nk(), mid_emb, 2 * cout)
        p["co_w"], p["co_b"] = conv_init(nk(), cout, cout)
        if sample is not None:
            p["hs_w"], p["hs_b"] = conv_init(nk(), cin, cin)
            p["xs_w"], p["xs_b"] = conv_init(nk(), cin, cin)
        if cin != cout:
            p["sk_w"], p["sk_b"] = lin_init(nk(), cin, cout, dtype=jnp.bfloat16)
        all_res.append(p)
        return {"type": "res", "p": p}

    def make_attres(cin, cout, nheads):
        r = make_res(cin, cout)
        dh = cout // nheads
        a = {"heads": nheads,
             "gn_g": jnp.ones((cout,), jnp.float32),
             "gn_b": jnp.zeros((cout,), jnp.float32)}
        # qkv packed head-major (C, heads, 3, dh); attention scale 1/sqrt(dh)
        # folded into the q columns (no O(T^2) scale inside the kernel).
        wq = jax.random.normal(nk(), (cout, nheads, 3, dh), jnp.float32) \
            / jnp.sqrt(float(cout))
        wq = wq.at[:, :, 0, :].multiply(1.0 / math.sqrt(dh))
        a["qkv_w"] = wq.reshape(cout, 3 * cout).astype(jnp.bfloat16)
        a["qkv_b"] = jnp.zeros((3 * cout,), jnp.float32)
        a["pr_w"], a["pr_b"] = lin_init(nk(), cout, cout, dtype=jnp.bfloat16)
        return {"type": "attres", "p": r["p"], "a": a}

    params = {}
    params["time_w1"], params["time_b1"] = lin_init(nk(), t_emb_size, mid_emb)
    params["time_w2"], params["time_b2"] = lin_init(nk(), mid_emb, mid_emb)
    params["img_w1"], params["img_b1"] = lin_init(nk(), i_emb_size, mid_emb)
    params["img_w2"], params["img_b2"] = lin_init(nk(), mid_emb, mid_emb)
    params["in_w"], params["in_b"] = conv_init(nk(), in_channels, base_channels)
    params["out_gn_g"] = jnp.ones((base_channels,), jnp.float32)
    params["out_gn_b"] = jnp.zeros((base_channels,), jnp.float32)
    # zero_module: final conv weights & bias are zero (exact PyTorch semantics)
    params["out_w"] = jnp.zeros((3, 3, base_channels, out_channels), jnp.bfloat16)
    params["out_b"] = jnp.zeros((out_channels,), jnp.float32)

    down, skip_dims = [], []
    cur_att = 0
    ch_out = mults[0] * base_channels
    factor = 1
    last_att, last_head, head = False, None, None
    for i, m in enumerate(mults):
        ch_in = ch_out
        ch_out = m * base_channels
        att = factor in att_factors
        if att:
            head = heads[cur_att]
            cur_att += 1
            last_att, last_head = True, head
        else:
            last_att, last_head = False, None
        blocks = []
        ci = ch_in
        for _ in range(res_blocks):
            blocks.append(make_attres(ci, ch_out, head) if att else make_res(ci, ch_out))
            ci = ch_out
        skip_dims.append(ch_out)
        down.append(blocks)
        if i < len(mults) - 1:
            down.append([make_res(ci, ch_out, sample="down")])
            skip_dims.append(ch_out)
            factor *= 2

    mid = [make_attres(ci, ch_out, last_head) if last_att else make_res(ci, ch_out),
           make_res(ci, ch_out)]

    up = []
    for i, m in reversed(list(enumerate(mults))):
        ch_in = ch_out
        ch_out = m * base_channels
        att = factor in att_factors
        if att:
            cur_att -= 1
            head = heads[cur_att]
        ci = ch_in + skip_dims.pop()
        blocks = []
        for _ in range(res_blocks):
            blocks.append(make_attres(ci, ch_out, head) if att else make_res(ci, ch_out))
            ci = ch_out
        up.append(blocks)
        if i > 0:
            added = skip_dims.pop()
            up.append([make_res(ci + added, ch_out, sample="up")])
            factor //= 2

    params["down"], params["mid"], params["up"] = down, mid, up

    # one concatenated weight for ALL per-ResBlock emb->scale/shift projections
    off, slices = 0, {}
    for p in all_res:
        slices[p["bid"]] = (off, p["cout"])
        off += 2 * p["cout"]
    params["emb_all_w"] = jnp.concatenate([p["emb_w"] for p in all_res], axis=1)
    params["emb_all_b"] = jnp.concatenate([p["emb_b"] for p in all_res], axis=0)
    params["emb_slices"] = slices
    return params


# ----------------------------------------------------------------------------
# Forward pass
# ----------------------------------------------------------------------------

def _nearest2x(x):
    # TODO(synk): replicate rows/cols inside the conv kernel to avoid this one
    # HBM materialization of the 4x tensor (GN commutes with replication, so the
    # fused GN+SiLU+conv below stays mathematically exact).
    return jnp.repeat(jnp.repeat(x, 2, axis=1), 2, axis=2)


def _res_apply(p, x, emb_ss):
    scale, shift = emb_ss
    cin, cout, sample = p["cin"], p["cout"], p["sample"]
    gn1 = (p["gn1_g"], p["gn1_b"])
    gn2 = (p["gn2_g"], p["gn2_b"])

    if sample == "down":
        h = fused_conv3x3(x, p["hs_w"], p["hs_b"], gn=gn1, silu=True, stride=2)
        xs = fused_conv3x3(x, p["xs_w"], p["xs_b"], stride=2)
        h = fused_conv3x3(h, p["ci_w"], p["ci_b"])
    elif sample == "up":
        xu = _nearest2x(x)
        h = fused_conv3x3(xu, p["hs_w"], p["hs_b"], gn=gn1, silu=True)
        xs = fused_conv3x3(xu, p["xs_w"], p["xs_b"])
        h = fused_conv3x3(h, p["ci_w"], p["ci_b"])
    else:
        h = fused_conv3x3(x, p["ci_w"], p["ci_b"], gn=gn1, silu=True)
        xs = x

    # GN2 * (1+scale) + shift, SiLU, conv, + (skip-projected) residual — one call.
    # (dropout omitted: inference)
    if cin != cout:
        return fused_conv3x3(h, p["co_w"], p["co_b"], gn=gn2, scale=scale,
                             shift=shift, silu=True, residual=xs,
                             skip_w=p["sk_w"], skip_b=p["sk_b"])
    return fused_conv3x3(h, p["co_w"], p["co_b"], gn=gn2, scale=scale,
                         shift=shift, silu=True, residual=xs)


def _attn_apply(a, x):
    N, H, W, C = x.shape
    heads = a["heads"]
    T = H * W
    xr = x.reshape(N, T, C)
    qkv = gn_linear(xr, a["gn_g"], a["gn_b"], a["qkv_w"], a["qkv_b"])   # (N,T,3C)
    o = attention(qkv, heads)                                            # (N,T,C)
    out = linear(o.reshape(N * T, C), a["pr_w"], a["pr_b"],
                 residual=xr.reshape(N * T, C), out_dtype=jnp.bfloat16)
    return out.reshape(N, H, W, C)


def _apply_block(desc, x, ss):
    p = desc["p"]
    x = _res_apply(p, x, ss[p["bid"]])
    if desc["type"] == "attres":
        x = _attn_apply(desc["a"], x)
    return x


def unet_forward(params, x_nchw, t_emb, i_emb):
    x = jnp.transpose(x_nchw, (0, 2, 3, 1)).astype(jnp.bfloat16)   # NCHW -> NHWC
    t = linear(linear(t_emb, params["time_w1"], params["time_b1"], act="silu"),
               params["time_w2"], params["time_b2"])
    im = linear(linear(i_emb, params["img_w1"], params["img_b1"], act="silu"),
                params["img_w2"], params["img_b2"])
    emb = t + im                                                    # (N, mid_emb) f32

    # one batched matmul for every block's SiLU(emb)->scale/shift projection
    eo_all = linear(emb, params["emb_all_w"], params["emb_all_b"], pre_silu=True)
    ss = {}
    for bid, (off, cout) in params["emb_slices"].items():
        ss[bid] = (eo_all[:, off:off + cout], eo_all[:, off + cout:off + 2 * cout])

    x = fused_conv3x3(x, params["in_w"], params["in_b"])
    outs = []
    for blocks in params["down"]:
        for b in blocks:
            x = _apply_block(b, x, ss)
        outs.append(x)
    for b in params["mid"]:
        x = _apply_block(b, x, ss)
    for blocks in params["up"]:
        xp = outs.pop()
        x = jnp.concatenate([xp, x], axis=-1)      # torch.cat dim=1 == channel axis
        for b in blocks:
            x = _apply_block(b, x, ss)
    out = fused_conv3x3(x, params["out_w"], params["out_b"],
                        gn=(params["out_gn_g"], params["out_gn_b"]), silu=True)
    return jnp.transpose(out, (0, 3, 1, 2)).astype(jnp.float32)    # NHWC -> NCHW


# ----------------------------------------------------------------------------
# Demo
# ----------------------------------------------------------------------------

if __name__ == "__main__":
    # Small config consistent with the module structure: base_channels=64,
    # mults=(1,2), 1 res block / resolution, attention at downsample factor 2
    # with 2 heads (dh=64 keeps lanes reasonably filled), mid_emb=64.
    params = build_unet(
        jax.random.PRNGKey(0),
        base_channels=64, mults=(1, 2), res_blocks=1,
        att_factors=(2,), heads=(2,),
        i_emb_size=32, t_emb_size=32, mid_emb=64,
        in_channels=3, out_channels=6,
    )

    kx, kt, ki = jax.random.split(jax.random.PRNGKey(0), 3)
    x = jax.random.normal(kx, (2, 3, 16, 16), jnp.float32)   # NCHW like PyTorch
    t_emb = jax.random.normal(kt, (2, 32), jnp.float32)
    i_emb = jax.random.normal(ki, (2, 32), jnp.float32)

    # Single jitted program: removes per-pallas_call dispatch overhead and lets
    # XLA fuse the residual glue (transposes, concats, FiLM slices, upsample).
    fwd = jax.jit(lambda xx, tt, ii: unet_forward(params, xx, tt, ii))
    try:
        out = jax.block_until_ready(fwd(x, t_emb, i_emb))
    except Exception:
        # A Mosaic lowering corner-case under jit -> run eagerly; the per-call
        # optimized-path probe inside fused_conv3x3 then selects a portable path.
        out = jax.block_until_ready(unet_forward(params, x, t_emb, i_emb))

    assert out.shape == (2, 6, 16, 16), out.shape
    assert bool(jnp.all(jnp.isfinite(out)))
    print("KERNEL_OK")
</pallas_src>

<mosaic_0001>
module attributes {stable_mosaic.version = 11 : i64} {
  func.func @_linear_kernel(%arg0: memref<2x32xf32, #tpu.memory_space<vmem>>, %arg1: memref<32x64xf32, #tpu.memory_space<vmem>>, %arg2: memref<1x64xf32, #tpu.memory_space<vmem>>, %arg3: memref<2x64xf32, #tpu.memory_space<vmem>>) attributes {dimension_semantics = [], scalar_prefetch = 0 : i64, scratch_operands = 0 : i64, tpu.core_type = #tpu.core_type<tc>} {
    %c0 = arith.constant 0 : index
    %c0_0 = arith.constant 0 : index
    %0 = vector.load %arg0[%c0, %c0_0] : memref<2x32xf32, #tpu.memory_space<vmem>>, vector<2x32xf32>
    %c0_1 = arith.constant 0 : index
    %c0_2 = arith.constant 0 : index
    %1 = vector.load %arg1[%c0_1, %c0_2] : memref<32x64xf32, #tpu.memory_space<vmem>>, vector<32x64xf32>
    %cst = arith.constant dense<0.000000e+00> : vector<2x64xf32>
    %2 = tpu.matmul %0, %1, %cst {dimension_numbers = #tpu.dot_dimension_numbers<[1], [0], [0], [1], [0, 0, 1, 1], [], []>} : vector<2x32xf32>, vector<32x64xf32>, vector<2x64xf32> -> vector<2x64xf32>
    %c0_3 = arith.constant 0 : index
    %c0_4 = arith.constant 0 : index
    %3 = vector.load %arg2[%c0_3, %c0_4] : memref<1x64xf32, #tpu.memory_space<vmem>>, vector<1x64xf32>
    %4 = vector.broadcast %3 : vector<1x64xf32> to vector<2x64xf32>
    %5 = arith.addf %2, %4 : vector<2x64xf32>
    %6 = arith.negf %5 : vector<2x64xf32>
    %7 = math.exp %6 : vector<2x64xf32>
    %cst_5 = arith.constant 1.000000e+00 : f32
    %8 = vector.broadcast %cst_5 : f32 to vector<2x64xf32>
    %9 = arith.addf %8, %7 : vector<2x64xf32>
    %10 = arith.divf %8, %9 : vector<2x64xf32>
    %11 = arith.mulf %5, %10 : vector<2x64xf32>
    %c0_6 = arith.constant 0 : index
    %c0_7 = arith.constant 0 : index
    %12 = vector.load %arg3[%c0_6, %c0_7] : memref<2x64xf32, #tpu.memory_space<vmem>>, vector<2x64xf32>
    tpu.vector_store %arg3[%c0_6, %c0_7], %11 {strides = array<i32>} : memref<2x64xf32, #tpu.memory_space<vmem>>, vector<2x64xf32>,
    return
  }
}

</mosaic_0001>

<bundles_post_ra>
// kernel: tpu_custom_call.1
= control target key start
LH: loop header
LB: loop body
LE: loop exit
PB: predicated region body
PF: predicated region fallthrough
CT: control target
= control target key end

     0   :  { %8 = vsyncpa [#allocation3], 0  ;;  %s245_s0 = inlined_call_operand.hbm [shape: f32[2,32], index: 0, kind: input, shape index: {}]   ;;  %s246_s1 = inlined_call_operand.hbm [shape: f32[32,64], index: 1, kind: input, shape index: {}]   ;;  %s247_s2 = inlined_call_operand.vmem [shape: f32[1,64], index: 2, kind: input, shape index: {}]   ;;  %s248_s3 = inlined_call_operand.hbm [shape: f32[2,64], index: 3, kind: output, shape index: {}]  }
   0x1   :  { %9 = vsyncpa [#allocation6], 0 }
   0x2   :  { %10 = vsyncpa [#allocation4], 0  ;;  %s16_s14 = sshll.u32 %s245_s0, 4  ;;  %s208_s15 = smov [#allocation2]   ;;  %s17_s14 = int_to_ptr.hbm [resolvable:$true] %s16_s14 }
   0x3   :  { %s18_s16 = sshll.u32 %s208_s15, 4  ;;  %s26_s19 = sshll.u32 %s246_s1, 4  ;;  %s19_s16 = int_to_ptr.vmem [resolvable:$true] %s18_s16  ;;  %s27_s19 = int_to_ptr.hbm [resolvable:$true] %s26_s19 }
   0x4   :  { %21 = dma.hbm_to_vmem [thread:$0]  %s17_s14, 32, %s19_s16, [#allocation3]  }
   0x5   :  { %s209_s20 = smov [#allocation5]   ;;  %s210_s22 = smov 128  }
   0x6   :  { %s28_s21 = sshll.u32 %s209_s20, 4  ;;  %s211_s23 = smov 8   ;;  %s29_s21 = int_to_ptr.vmem [resolvable:$true] %s28_s21 }
   0x7   :  { %34 = dma.hbm_to_vmem [thread:$0]  %s27_s19, 512, %s29_s21, [#allocation6], %s210_s22, %s210_s22, %s211_s23  }
   0x8   :  { %202 = dma.done.wait [#allocation3], 32  }
   0x9   :  { %203 = vsyncadd [#allocation3], 4294967264 }
   0xa   :  { %204 = dma.done.wait [#allocation6], 512  }
   0xb   :  { %205 = vsyncadd [#allocation6], 4294966784  ;;  %v49_v0 = vld [vmem:[#allocation5 + $0x18] sm:$0xff]  ;;  %v48_v1 = vld [vmem:[#allocation5 + $0x10] sm:$0xff]  ;;  %vm54_vm0 = vcmask 261120   ;;  %s212_s24 = smov [#allocation7]  }
   0xc   :  { %70 = vmatpush.msra.mxu0 %v49_v0  ;;  %v47_v2 = vld [vmem:[#allocation5 + $0x8] sm:$0xff]  ;;  %v46_v3 = vld [vmem:[#allocation5] sm:$0xff]  ;;  %v45_v4 = vld [vmem:[#allocation2] sm:$0x3]  ;;  %s107_s27 = sshll.u32 %s248_s3, 4  ;;  %vm98_vm5 = vcmask 517120   ;;  %s108_s27 = int_to_ptr.hbm [resolvable:$true] %s107_s27 }
   0xd   :  { %v125_v5 = vld [vmem:[%s247_s2] ss:$0 sm:$0xff]  ;;  %s105_s2 = sshll.u32 %s212_s24, 4  ;;  %s106_s2 = int_to_ptr.vmem [resolvable:$true] %s105_s2 }
   0xe   :  { %71 = vmatpush.msra.mxu0 %v48_v1 }
  0x10   :  { %72 = vmatpush.msra.mxu0 %v47_v2 }
  0x12   :  { %73 = vmatpush.msra.mxu0 %v46_v3 }
  0x13   :  { %118 = vmatmul.msk.f32.vlgmr.msra.gmra.mxu0 %vm54_vm0, %v45_v4 }
  0x90   :  { %v75_v6 = vpop.f32.mrf.mxu0 }
  0x91   :  { %v76_v7 = vadd.f32 %v125_v5, %v75_v6 }
  0x93   :  { %v119_v8 = vmul.f32 -1.442695, %v76_v7 }
  0x95   :  { %126 = vpow2.f32 %v119_v8 }
  0x9b   :  { %v127_v9 = vpop.eup %126 }
  0x9c   :  { %v81_v10 = vadd.f32 1.0, %v127_v9 }
  0x9e   :  { %128 = vrcp.f32 %v81_v10  ;;  %v93_v14 = vand.u32 2147483648, %v81_v10  ;;  %v91_v16 = vand.u32 2147483647, %v81_v10  ;;  %vm87_vm2 = vweird.f32 %v81_v10 }
  0xa0   :  { %v94_v18 = vor.u32 1.1754944e-38, %v93_v14  ;;  %vm92_vm4 = vcmp.eq.f32.partialorder %v91_v16, 8.507059e+37 }
  0xa4   :  { %v129_v11 = vpop.eup %128 }
  0xa5   :  { %v83_v12 = vmul.f32 %v129_v11, %v81_v10  ;;  %vm88_vm1 = vweird.f32 %v129_v11 }
  0xa6   :  { %vm89_vm3 = vmor %vm87_vm2, %vm88_vm1 }
  0xa7   :  { %v84_v13 = vsub.f32 1.0, %v83_v12 }
  0xa9   :  { %v85_v15 = vmul.f32 %v129_v11, %v84_v13 }
  0xab   :  { %v86_v17 = vadd.f32 %v129_v11, %v85_v15 }
  0xad   :  { %v90_v19 = vsel %vm89_vm3, %v129_v11, %v86_v17 }
  0xae   :  { %v95_v20 = vsel %vm92_vm4, %v94_v18, %v90_v19 }
  0xaf   :  { %v97_v21 = vmul.f32 %v95_v20, %v76_v7 }
  0xb1   :  { %99 = vst.msk [vmem:[#allocation7] sm:$0x3] %vm98_vm5, %v97_v21 }
  0xb2   :  { %110 = dma.vmem_to_hbm [thread:$0]  %s106_s2, 32, %s108_s27, [#allocation4]  }
  0xb3   :  { %206 = dma.done.wait [#allocation4], 32  }
  0xb4   :  { %207 = vsyncadd [#allocation4], 4294967264 }
  0xb5   :  { %115 = vsyncpa [#allocation3], 1 }
  0xb6   :  { %116 = vsyncpa [#allocation6], 1 }
  0xb7   :  { %117 = vsyncpa [#allocation4], 1 }

</bundles_post_ra>
